<compile_context>
chip_gen: v7x
topology: tpu7x:2x2x1
jax: 0.10.0
libtpu: 0.0.40
codegen_flags: <defaults>
</compile_context>

<pallas_src>
import jax
import jax.numpy as jnp
from jax.experimental import pallas as pl
from jax.experimental.pallas import tpu as pltpu


def _round_up(x, m):
    return (x + m - 1) // m * m


def _use_bf16_epilogue():
    """bf16 VPU exists on v6e/v7x; keep the f32 epilogue on v5e and older (and non-TPU)."""
    try:
        kind = jax.devices()[0].device_kind.lower()
    except Exception:
        return False
    if "tpu" not in kind:
        return False
    for old in ("v2", "v3", "v4", "v5"):
        if old in kind:
            return False
    return True


def _vmem_limit_bytes(TB, in_dim, H1, H2, out_dim):
    """~2x the actual per-call footprint (resident weights + double-buffered tiles +
    live intermediates), clamped to [16 MiB, 64 MiB]."""
    weights = 2 * (in_dim * H1 + H1 * H2 + H2 * out_dim) + 4 * (H1 + H2 + out_dim)
    io_tiles = 2 * TB * (in_dim * 4 + out_dim * 4)                    # double-buffered x / out
    interm = TB * (2 * in_dim + 6 * H1 + 6 * H2 + 4 * out_dim)        # f32 + bf16 temporaries
    footprint = weights + io_tiles + interm
    return int(min(max(2 * footprint + (4 << 20), 16 << 20), 64 << 20))


def _make_mlp_kernel(bf16_epilogue):
    def _mlp_kernel(x_ref, w1_ref, b1_ref, w2_ref, b2_ref, w3_ref, b3_ref, o_ref):
        # Layer 1: bf16 MXU matmul, f32 accumulate.
        x = x_ref[...].astype(jnp.bfloat16)
        h1 = jnp.dot(x, w1_ref[...], preferred_element_type=jnp.float32)
        if bf16_epilogue:
            # Packed bf16 VALU epilogue (v6e/v7x): bias (bf16) + ReLU on [16,128] vregs.
            h1 = jnp.maximum(h1.astype(jnp.bfloat16) + b1_ref[...], 0.0)
        else:
            # f32 epilogue for v5e (MXU-bound there; no bf16 VPU).
            h1 = jnp.maximum(h1 + b1_ref[...], 0.0).astype(jnp.bfloat16)

        # Layer 2.
        h2 = jnp.dot(h1, w2_ref[...], preferred_element_type=jnp.float32)
        if bf16_epilogue:
            h2 = jnp.maximum(h2.astype(jnp.bfloat16) + b2_ref[...], 0.0)
        else:
            h2 = jnp.maximum(h2 + b2_ref[...], 0.0).astype(jnp.bfloat16)

        # Output layer: narrow (out_dim) result, bias add + store kept in f32 for precision.
        out = jnp.dot(h2, w3_ref[...], preferred_element_type=jnp.float32)
        o_ref[...] = (out + b3_ref[...]).astype(o_ref.dtype)

    return _mlp_kernel


def fully_connected_network(x, params, *, tile_batch=2048):
    """Fused MLP forward.

    x: (B, input_dim) f32.
    params: dict with w1/w2/w3 stored pre-transposed as (in, out) f32 and b1/b2/b3 as (1, out).
    """
    B, in_dim = x.shape
    H1 = params["w1"].shape[1]
    H2 = params["w2"].shape[1]
    out_dim = params["w3"].shape[1]

    bf16_epi = _use_bf16_epilogue()
    bias_dtype = jnp.bfloat16 if bf16_epi else jnp.float32

    # Weights -> bf16 for the MXU. Hidden biases match the epilogue dtype; final bias f32.
    w1 = params["w1"].astype(jnp.bfloat16)
    w2 = params["w2"].astype(jnp.bfloat16)
    w3 = params["w3"].astype(jnp.bfloat16)
    b1 = params["b1"].astype(bias_dtype)
    b2 = params["b2"].astype(bias_dtype)
    b3 = params["b3"].astype(jnp.float32)

    # Pad batch only to a multiple of 8 sublanes (cheap / usually a no-op); the ragged
    # last grid block is handled by Pallas (row-wise compute, wrapper slices [:B]).
    B8 = _round_up(B, 8)
    if B8 != B:
        x = jnp.pad(x, ((0, B8 - B), (0, 0)))

    # Tile selection: one block for small batches (actor inference); >= 2 blocks for
    # B > 256 so the parallel batch axis can megacore-shard on v7x; cap at tile_batch.
    if B8 <= 256:
        TB = B8
    else:
        TB = min(tile_batch, _round_up(pl.cdiv(B8, 2), 8))
    grid = (pl.cdiv(B8, TB),)

    flops = 2 * B8 * (in_dim * H1 + H1 * H2 + H2 * out_dim)
    bytes_accessed = (
        B8 * in_dim * 4                                  # x
        + (w1.size + w2.size + w3.size) * 2              # bf16 weights
        + b1.size * b1.dtype.itemsize + b2.size * b2.dtype.itemsize + b3.size * 4
        + B8 * out_dim * 4                               # output (unpadded, f32)
    )

    out = pl.pallas_call(
        _make_mlp_kernel(bf16_epi),
        out_shape=jax.ShapeDtypeStruct((B8, out_dim), jnp.float32),
        grid=grid,
        in_specs=[
            pl.BlockSpec((TB, in_dim), lambda i: (i, 0)),       # x: streamed over batch
            pl.BlockSpec((in_dim, H1), lambda i: (0, 0)),       # weights/biases: VMEM-resident
            pl.BlockSpec((1, H1), lambda i: (0, 0)),
            pl.BlockSpec((H1, H2), lambda i: (0, 0)),
            pl.BlockSpec((1, H2), lambda i: (0, 0)),
            pl.BlockSpec((H2, out_dim), lambda i: (0, 0)),
            pl.BlockSpec((1, out_dim), lambda i: (0, 0)),
        ],
        out_specs=pl.BlockSpec((TB, out_dim), lambda i: (i, 0)),
        compiler_params=pltpu.CompilerParams(
            dimension_semantics=("parallel",),
            vmem_limit_bytes=_vmem_limit_bytes(TB, in_dim, H1, H2, out_dim),
        ),
        cost_estimate=pl.CostEstimate(
            flops=flops, transcendentals=0, bytes_accessed=bytes_accessed),
    )(x, w1, b1, w2, b2, w3, b3)

    return out[:B]


def init_params(key, input_dim, output_dim, hidden_sizes=(256, 256)):
    """Deterministic synthetic init mirroring the module's layer shapes.

    PyTorch default init: Kaiming-uniform weights / uniform biases; last layer
    xavier_uniform(gain=0.01) with zero bias.  Weights stored pre-transposed as
    (in, out); biases as (1, out).
    """
    params = {}
    d = input_dim
    dims = list(hidden_sizes) + [output_dim]
    for i, h in enumerate(dims, start=1):
        key, kw, kb = jax.random.split(key, 3)
        bound = 1.0 / jnp.sqrt(d)
        if i == len(dims):
            gain = 0.01
            xav = gain * jnp.sqrt(6.0 / (d + h))
            w = jax.random.uniform(kw, (d, h), jnp.float32, -xav, xav)
            b = jnp.zeros((1, h), jnp.float32)
        else:
            w = jax.random.uniform(kw, (d, h), jnp.float32, -bound, bound)
            b = jax.random.uniform(kb, (1, h), jnp.float32, -bound, bound)
        params[f"w{i}"] = w
        params[f"b{i}"] = b
        d = h
    return params


def reference_forward(x, params):
    h = jnp.maximum(x @ params["w1"] + params["b1"], 0.0)
    h = jnp.maximum(h @ params["w2"] + params["b2"], 0.0)
    return h @ params["w3"] + params["b3"]


if __name__ == "__main__":
    key = jax.random.PRNGKey(0)
    batch, input_dim, output_dim = 8, 32, 8

    kx, kp = jax.random.split(key)
    x = jax.random.normal(kx, (batch, input_dim), dtype=jnp.float32)
    params = init_params(kp, input_dim, output_dim, hidden_sizes=(256, 256))

    y = fully_connected_network(x, params)
    y = jax.block_until_ready(y)

    y_ref = reference_forward(x, params)
    assert y.shape == (batch, output_dim)
    # bf16 MXU with f32 accumulation vs f32 reference -> loosened tolerance.
    assert jnp.allclose(y, y_ref, atol=2e-3, rtol=2e-2), "mismatch vs reference"

    print("KERNEL_OK")
</pallas_src>

<mosaic_0001>
module attributes {stable_mosaic.version = 11 : i64} {
  func.func @_mlp_kernel(%arg0: i32, %arg1: memref<8x32xf32, #tpu.memory_space<vmem>>, %arg2: memref<32x256xbf16, #tpu.memory_space<vmem>>, %arg3: memref<1x256xf32, #tpu.memory_space<vmem>>, %arg4: memref<256x256xbf16, #tpu.memory_space<vmem>>, %arg5: memref<1x256xf32, #tpu.memory_space<vmem>>, %arg6: memref<256x8xbf16, #tpu.memory_space<vmem>>, %arg7: memref<1x8xf32, #tpu.memory_space<vmem>>, %arg8: memref<8x8xf32, #tpu.memory_space<vmem>>) attributes {dimension_semantics = [#tpu.dimension_semantics<parallel>], iteration_bounds = array<i64: 1>, scalar_prefetch = 0 : i64, scratch_operands = 0 : i64, tpu.core_type = #tpu.core_type<tc>, window_params = [{transform_indices = @transform_0, window_bounds = array<i64: 8, 32>}, {pipeline_mode = #tpu.pipeline_mode<synchronous>, transform_indices = @transform_1, window_bounds = array<i64: 32, 256>}, {pipeline_mode = #tpu.pipeline_mode<synchronous>, transform_indices = @transform_2, window_bounds = array<i64: 1, 256>}, {pipeline_mode = #tpu.pipeline_mode<synchronous>, transform_indices = @transform_3, window_bounds = array<i64: 256, 256>}, {pipeline_mode = #tpu.pipeline_mode<synchronous>, transform_indices = @transform_4, window_bounds = array<i64: 1, 256>}, {pipeline_mode = #tpu.pipeline_mode<synchronous>, transform_indices = @transform_5, window_bounds = array<i64: 256, 8>}, {pipeline_mode = #tpu.pipeline_mode<synchronous>, transform_indices = @transform_6, window_bounds = array<i64: 1, 8>}, {transform_indices = @transform_7, window_bounds = array<i64: 8, 8>}]} {
    %c0 = arith.constant 0 : index
    %c0_0 = arith.constant 0 : index
    %0 = vector.load %arg1[%c0, %c0_0] : memref<8x32xf32, #tpu.memory_space<vmem>>, vector<8x32xf32>
    %1 = arith.truncf %0 : vector<8x32xf32> to vector<8x32xbf16>
    %c0_1 = arith.constant 0 : index
    %c0_2 = arith.constant 0 : index
    %2 = vector.load %arg2[%c0_1, %c0_2] : memref<32x256xbf16, #tpu.memory_space<vmem>>, vector<32x256xbf16>
    %cst = arith.constant dense<0.000000e+00> : vector<8x256xf32>
    %3 = tpu.matmul %1, %2, %cst {dimension_numbers = #tpu.dot_dimension_numbers<[1], [0], [0], [1], [0, 0, 1, 1], [], []>} : vector<8x32xbf16>, vector<32x256xbf16>, vector<8x256xf32> -> vector<8x256xf32>
    %c0_3 = arith.constant 0 : index
    %c0_4 = arith.constant 0 : index
    %4 = vector.load %arg3[%c0_3, %c0_4] : memref<1x256xf32, #tpu.memory_space<vmem>>, vector<1x256xf32>
    %5 = vector.broadcast %4 : vector<1x256xf32> to vector<8x256xf32>
    %6 = arith.addf %3, %5 : vector<8x256xf32>
    %cst_5 = arith.constant 0.000000e+00 : f32
    %7 = vector.broadcast %cst_5 : f32 to vector<8x256xf32>
    %8 = arith.maximumf %6, %7 : vector<8x256xf32>
    %9 = arith.truncf %8 : vector<8x256xf32> to vector<8x256xbf16>
    %c0_6 = arith.constant 0 : index
    %c0_7 = arith.constant 0 : index
    %10 = vector.load %arg4[%c0_6, %c0_7] : memref<256x256xbf16, #tpu.memory_space<vmem>>, vector<256x256xbf16>
    %cst_8 = arith.constant dense<0.000000e+00> : vector<8x256xf32>
    %11 = tpu.matmul %9, %10, %cst_8 {dimension_numbers = #tpu.dot_dimension_numbers<[1], [0], [0], [1], [0, 0, 1, 1], [], []>} : vector<8x256xbf16>, vector<256x256xbf16>, vector<8x256xf32> -> vector<8x256xf32>
    %c0_9 = arith.constant 0 : index
    %c0_10 = arith.constant 0 : index
    %12 = vector.load %arg5[%c0_9, %c0_10] : memref<1x256xf32, #tpu.memory_space<vmem>>, vector<1x256xf32>
    %13 = vector.broadcast %12 : vector<1x256xf32> to vector<8x256xf32>
    %14 = arith.addf %11, %13 : vector<8x256xf32>
    %cst_11 = arith.constant 0.000000e+00 : f32
    %15 = vector.broadcast %cst_11 : f32 to vector<8x256xf32>
    %16 = arith.maximumf %14, %15 : vector<8x256xf32>
    %17 = arith.truncf %16 : vector<8x256xf32> to vector<8x256xbf16>
    %c0_12 = arith.constant 0 : index
    %c0_13 = arith.constant 0 : index
    %18 = vector.load %arg6[%c0_12, %c0_13] : memref<256x8xbf16, #tpu.memory_space<vmem>>, vector<256x8xbf16>
    %cst_14 = arith.constant dense<0.000000e+00> : vector<8x8xf32>
    %19 = tpu.matmul %17, %18, %cst_14 {dimension_numbers = #tpu.dot_dimension_numbers<[1], [0], [0], [1], [0, 0, 1, 1], [], []>} : vector<8x256xbf16>, vector<256x8xbf16>, vector<8x8xf32> -> vector<8x8xf32>
    %c0_15 = arith.constant 0 : index
    %c0_16 = arith.constant 0 : index
    %20 = vector.load %arg7[%c0_15, %c0_16] : memref<1x8xf32, #tpu.memory_space<vmem>>, vector<1x8xf32>
    %21 = vector.broadcast %20 : vector<1x8xf32> to vector<8x8xf32>
    %22 = arith.addf %19, %21 : vector<8x8xf32>
    %c0_17 = arith.constant 0 : index
    %c0_18 = arith.constant 0 : index
    %23 = vector.load %arg8[%c0_17, %c0_18] : memref<8x8xf32, #tpu.memory_space<vmem>>, vector<8x8xf32>
    tpu.vector_store %arg8[%c0_17, %c0_18], %22 {strides = array<i32>} : memref<8x8xf32, #tpu.memory_space<vmem>>, vector<8x8xf32>,
    return
  }
  func.func @transform_0(%arg0: i32) -> (i32, i32) {
    %c0_i32 = arith.constant 0 : i32
    %c0_i32_0 = arith.constant 0 : i32
    return %arg0, %c0_i32 : i32, i32
  }
  func.func @transform_1(%arg0: i32) -> (i32, i32) {
    %c0_i32 = arith.constant 0 : i32
    %c0_i32_0 = arith.constant 0 : i32
    %c0_i32_1 = arith.constant 0 : i32
    return %c0_i32, %c0_i32_0 : i32, i32
  }
  func.func @transform_2(%arg0: i32) -> (i32, i32) {
    %c0_i32 = arith.constant 0 : i32
    %c0_i32_0 = arith.constant 0 : i32
    %c0_i32_1 = arith.constant 0 : i32
    return %c0_i32, %c0_i32_0 : i32, i32
  }
  func.func @transform_3(%arg0: i32) -> (i32, i32) {
    %c0_i32 = arith.constant 0 : i32
    %c0_i32_0 = arith.constant 0 : i32
    %c0_i32_1 = arith.constant 0 : i32
    return %c0_i32, %c0_i32_0 : i32, i32
  }
  func.func @transform_4(%arg0: i32) -> (i32, i32) {
    %c0_i32 = arith.constant 0 : i32
    %c0_i32_0 = arith.constant 0 : i32
    %c0_i32_1 = arith.constant 0 : i32
    return %c0_i32, %c0_i32_0 : i32, i32
  }
  func.func @transform_5(%arg0: i32) -> (i32, i32) {
    %c0_i32 = arith.constant 0 : i32
    %c0_i32_0 = arith.constant 0 : i32
    %c0_i32_1 = arith.constant 0 : i32
    return %c0_i32, %c0_i32_0 : i32, i32
  }
  func.func @transform_6(%arg0: i32) -> (i32, i32) {
    %c0_i32 = arith.constant 0 : i32
    %c0_i32_0 = arith.constant 0 : i32
    %c0_i32_1 = arith.constant 0 : i32
    return %c0_i32, %c0_i32_0 : i32, i32
  }
  func.func @transform_7(%arg0: i32) -> (i32, i32) {
    %c0_i32 = arith.constant 0 : i32
    %c0_i32_0 = arith.constant 0 : i32
    return %arg0, %c0_i32 : i32, i32
  }
}

</mosaic_0001>

<bundles_post_ra>
// kernel: tpu_custom_call.1
= control target key start
LH: loop header
LB: loop body
LE: loop exit
PB: predicated region body
PF: predicated region fallthrough
CT: control target
= control target key end

     0   :  { %12 = vsyncpa [#allocation3], 0  ;;  %s910_s0 = inlined_call_operand.vmem [shape: f32[8,32], index: 0, kind: input, shape index: {}]   ;;  %s911_s1 = inlined_call_operand.vmem [shape: bf16[32,256], index: 1, kind: input, shape index: {}]   ;;  %s912_s2 = inlined_call_operand.vmem [shape: f32[1,256], index: 2, kind: input, shape index: {}]   ;;  %s913_s3 = inlined_call_operand.hbm [shape: bf16[256,256], index: 3, kind: input, shape index: {}]   ;;  %s914_s4 = inlined_call_operand.vmem [shape: f32[1,256], index: 4, kind: input, shape index: {}]   ;;  %s915_s5 = inlined_call_operand.vmem [shape: bf16[256,8], index: 5, kind: input, shape index: {}]   ;;  %s916_s6 = inlined_call_operand.vmem [shape: f32[1,8], index: 6, kind: input, shape index: {}]   ;;  %s917_s7 = inlined_call_operand.hbm [shape: f32[8,8], index: 7, kind: output, shape index: {}]  }
   0x1   :  { %13 = vsyncpa [#allocation4], 0  ;;  %s769_s24 = smov [#allocation2]   ;;  %s721_s28 = scalar_lea.hbm %s913_s3, 4096 }
   0x2   :  { %s25_s25 = sshll.u32 %s769_s24, 4  ;;  %p722_p0 = scmp.ne.s32.totalorder %s913_s3, %s721_s28  ;;  %s26_s25 = int_to_ptr.vmem [resolvable:$true] %s25_s25 }
   0x3   :  { %p725_p1 = scmp.lt.u32.totalorder %s721_s28, %s913_s3 }
   0x5   :  { %p727_p2 = pnand %p725_p1, %p722_p0 }
   0x7   :  { %730 = shalt.err (!%p727_p2)
}
   0x8   :  { %s731_s10 = scalar_lea.vmem %s26_s25, 4096  ;;  %p736_p4 = scmp.lt.s32.totalorder %s26_s25, %s26_s25 }
   0x9   :  { %p732_p3 = scmp.ne.s32.totalorder %s26_s25, %s731_s10  ;;  %p737_p5 = scmp.lt.s32.totalorder %s731_s10, %s731_s10 }
   0xb   :  { %p738_p6 = por %p737_p5, %p736_p4 }
   0xd   :  { %p739_p7 = pnand %p738_p6, %p732_p3 }
   0xf   :  { %742 = shalt.err (!%p739_p7)
}
  0x10   :  { %s770_s11 = smov 128   ;;  %s771_s12 = smov 8  }
  0x11   :  { %31 = dma.hbm_to_vmem [thread:$0]  %s913_s3, 4096, %s26_s25, [#allocation3], %s770_s11, %s770_s11, %s771_s12  }
  0x12   :  { %765 = dma.done.wait [#allocation3], 4096  }
  0x13   :  { %766 = vsyncadd [#allocation3], 4294963200  ;;  %v772_v0 = vmov 0   ;;  %v651_v1 = vld [vmem:[%s911_s1 + $0x4] ss:$8 sps:$4 sm:$0xff]   ;;  %vm80_vm0 = vcmask 261120   ;;  %v50_v51 = vlaneseq }
  0x14   :  { %116 = vmatprep.mubr.bf16.mxu0 %v772_v0  ;;  %v653_v2 = vld [vmem:[%s911_s1] ss:$8 sps:$4 sm:$0xff]   ;;  %84 = vmatprep.subr.bf16.mxu0 %v651_v1  ;;  %v654_v3 = vld [vmem:[%s911_s1 + $0x14] ss:$8 sps:$4 sm:$0xff]   ;;  %v656_v4 = vld [vmem:[%s911_s1 + $0x10] ss:$8 sps:$4 sm:$0xff]  }
  0x15   :  { %v42_v5 = vld [vmem:[%s910_s0] sm:$0xff]  ;;  %85 = vmatpush1.bf16.msra.mxu0 %v653_v2  ;;  %v660_v8 = vld [vmem:[#allocation2 + $0x14] ss:$8 sps:$4 sm:$0xff]   ;;  %v662_v10 = vld [vmem:[#allocation2 + $0x10] ss:$8 sps:$4 sm:$0xff]   ;;  %v51_v52 = vshrl.u32 %v50_v51, 7 }
  0x16   :  { %v657_v6 = vld [vmem:[#allocation2 + $0x4] ss:$8 sps:$4 sm:$0xff]   ;;  %86 = vmatprep.subr.bf16.mxu0 %v654_v3  ;;  %v659_v7 = vld [vmem:[#allocation2] ss:$8 sps:$4 sm:$0xff]   ;;  %v43_v9 = vpack.c.bf16 %v42_v5, %v42_v5  ;;  %v666_v13 = vld [vmem:[#allocation2 + $0x34] ss:$8 sps:$4 sm:$0xff]  }
  0x17   :  { %333 = vmatprep.subr.bf16.mxu1 %v657_v6  ;;  %v663_v11 = vld [vmem:[#allocation2 + $0x24] ss:$8 sps:$4 sm:$0xff]   ;;  %v665_v12 = vld [vmem:[#allocation2 + $0x20] ss:$8 sps:$4 sm:$0xff]   ;;  %v668_v14 = vld [vmem:[#allocation2 + $0x30] ss:$8 sps:$4 sm:$0xff]  }
  0x18   :  { %334 = vmatpush1.bf16.msra.mxu1 %v659_v7  ;;  %v669_v15 = vld [vmem:[#allocation2 + $0x44] ss:$8 sps:$4 sm:$0xff]   ;;  %v671_v16 = vld [vmem:[#allocation2 + $0x40] ss:$8 sps:$4 sm:$0xff]   ;;  %v672_v17 = vld [vmem:[#allocation2 + $0x54] ss:$8 sps:$4 sm:$0xff]  }
  0x19   :  { %87 = vmatpush1.bf16.msra.mxu0 %v656_v4  ;;  %335 = vmatprep.subr.bf16.mxu1 %v660_v8  ;;  %v674_v18 = vld [vmem:[#allocation2 + $0x50] ss:$8 sps:$4 sm:$0xff]   ;;  %v675_v19 = vld [vmem:[#allocation2 + $0x64] ss:$8 sps:$4 sm:$0xff]   ;;  %v677_v20 = vld [vmem:[#allocation2 + $0x60] ss:$8 sps:$4 sm:$0xff]  }
  0x1a   :  { %v678_v21 = vld [vmem:[#allocation2 + $0x74] ss:$8 sps:$4 sm:$0xff]   ;;  %v680_v22 = vld [vmem:[#allocation2 + $0x70] ss:$8 sps:$4 sm:$0xff]   ;;  %v681_v23 = vld [vmem:[#allocation2 + $0x84] ss:$8 sps:$4 sm:$0xff]  }
  0x1b   :  { %v683_v24 = vld [vmem:[#allocation2 + $0x80] ss:$8 sps:$4 sm:$0xff]   ;;  %v684_v25 = vld [vmem:[#allocation2 + $0x94] ss:$8 sps:$4 sm:$0xff]   ;;  %v686_v26 = vld [vmem:[#allocation2 + $0x90] ss:$8 sps:$4 sm:$0xff]  }
  0x1c   :  { %574 = vmatmul.mubr.msk.bf16.vlgmr.msra.gmra.mrb[0].mxu0 %vm80_vm0, %v43_v9  ;;  %336 = vmatpush1.bf16.msra.mxu1 %v662_v10  ;;  %v687_v27 = vld [vmem:[#allocation2 + $0xa4] ss:$8 sps:$4 sm:$0xff]   ;;  %v689_v28 = vld [vmem:[#allocation2 + $0xa0] ss:$8 sps:$4 sm:$0xff]   ;;  %v690_v29 = vld [vmem:[#allocation2 + $0xb4] ss:$8 sps:$4 sm:$0xff]  }
  0x1d   :  { %337 = vmatprep.subr.bf16.mxu1 %v663_v11  ;;  %v692_v30 = vld [vmem:[#allocation2 + $0xb0] ss:$8 sps:$4 sm:$0xff]   ;;  %v693_v31 = vld [vmem:[#allocation2 + $0xc4] ss:$8 sps:$4 sm:$0xff]   ;;  %v695_v32 = vld [vmem:[#allocation2 + $0xc0] ss:$8 sps:$4 sm:$0xff]  }
  0x1e   :  { %v696_v33 = vld [vmem:[#allocation2 + $0xd4] ss:$8 sps:$4 sm:$0xff]   ;;  %v698_v34 = vld [vmem:[#allocation2 + $0xd0] ss:$8 sps:$4 sm:$0xff]   ;;  %v699_v35 = vld [vmem:[#allocation2 + $0xe4] ss:$8 sps:$4 sm:$0xff]  }
  0x1f   :  { %v701_v36 = vld [vmem:[#allocation2 + $0xe0] ss:$8 sps:$4 sm:$0xff]   ;;  %v702_v37 = vld [vmem:[#allocation2 + $0xf4] ss:$8 sps:$4 sm:$0xff]   ;;  %v704_v38 = vld [vmem:[#allocation2 + $0xf0] ss:$8 sps:$4 sm:$0xff]  }
  0x20   :  { %338 = vmatpush1.bf16.msra.mxu1 %v665_v12  ;;  %v705_v39 = vld [vmem:[%s915_s5 + $0x40] sm:$0xff]   ;;  %v707_v41 = vld [vmem:[%s915_s5 + $0x48] sm:$0xff]   ;;  %v709_v43 = vld [vmem:[%s915_s5 + $0x50] sm:$0xff]   ;;  %v52_v53 = vsub.s32 0, %v51_v52  ;;  %v56_v55 = vsub.s32 1, %v51_v52  ;;  %vm553_vm1 = vcmask 64512  }
  0x21   :  { %339 = vmatprep.subr.bf16.mxu1 %v666_v13  ;;  %v706_v40 = vld [vmem:[%s915_s5] sm:$0xff]   ;;  %624 = vmatprep.subr.bf16.mxu0 %v705_v39  ;;  %v708_v42 = vld [vmem:[%s915_s5 + $0x8] sm:$0xff]   ;;  %v710_v44 = vld [vmem:[%s915_s5 + $0x10] sm:$0xff]  }
  0x22   :  { %625 = vmatpush3.bf16.msra.mxu0 %v706_v40  ;;  %v711_v45 = vld [vmem:[%s915_s5 + $0x58] sm:$0xff]   ;;  %v713_v47 = vld [vmem:[%s915_s5 + $0x60] sm:$0xff]   ;;  %v715_v49 = vld [vmem:[%s915_s5 + $0x68] sm:$0xff]  }
  0x23   :  { %626 = vmatprep.subr.bf16.mxu0 %v707_v41  ;;  %v712_v46 = vld [vmem:[%s915_s5 + $0x18] sm:$0xff]   ;;  %v714_v48 = vld [vmem:[%s915_s5 + $0x20] sm:$0xff]   ;;  %v716_v50 = vld [vmem:[%s915_s5 + $0x28] sm:$0xff]  }
  0x24   :  { %340 = vmatpush1.bf16.msra.mxu1 %v668_v14  ;;  %v48_v54 = vld [vmem:[%s912_s2] sm:$0x3]  ;;  %v717_v4 = vld [vmem:[%s915_s5 + $0x70] sm:$0xff]   ;;  %v719_v6 = vld [vmem:[%s915_s5 + $0x78] sm:$0xff]  }
  0x25   :  { %341 = vmatprep.subr.bf16.mxu1 %v669_v15  ;;  %v53_v56 = vrot.slane %v48_v54, %v52_v53  ;;  %v57_v57 = vrot.slane %v48_v54, %v56_v55  ;;  %v718_v5 = vld [vmem:[%s915_s5 + $0x30] sm:$0xff]   ;;  %v720_v7 = vld [vmem:[%s915_s5 + $0x38] sm:$0xff]   ;;  %v161_v8 = vld [vmem:[%s914_s4] sm:$0x3]  ;;  %s773_s4 = smov [#allocation5]  }
  0x26   :  { %627 = vmatpush3.bf16.msra.mxu0 %v708_v42  ;;  %v166_v9 = vrot.slane %v161_v8, %v52_v53  ;;  %v170_v10 = vrot.slane %v161_v8, %v56_v55  ;;  %s561_s9 = sshll.u32 %s773_s4, 4  ;;  %s562_s9 = int_to_ptr.vmem [resolvable:$true] %s561_s9 }
  0x27   :  { %628 = vmatprep.subr.bf16.mxu0 %v709_v43  ;;  %s743_s10 = scalar_lea.vmem %s562_s9, 128  ;;  %p748_p9 = scmp.lt.s32.totalorder %s562_s9, %s562_s9 }
  0x28   :  { %342 = vmatpush1.bf16.msra.mxu1 %v671_v16  ;;  %p744_p8 = scmp.ne.s32.totalorder %s562_s9, %s743_s10  ;;  %p749_p10 = scmp.lt.s32.totalorder %s743_s10, %s743_s10 }
  0x29   :  { %343 = vmatprep.subr.bf16.mxu1 %v672_v17 }
  0x2a   :  { %629 = vmatpush3.bf16.msra.mxu0 %v710_v44  ;;  %p750_p11 = por %p749_p10, %p748_p9 }
  0x2b   :  { %630 = vmatprep.subr.bf16.mxu0 %v711_v45 }
  0x2c   :  { %344 = vmatpush1.bf16.msra.mxu1 %v674_v18  ;;  %p751_p12 = pnand %p750_p11, %p744_p8 }
  0x2d   :  { %345 = vmatprep.subr.bf16.mxu1 %v675_v19 }
  0x2e   :  { %631 = vmatpush3.bf16.msra.mxu0 %v712_v46 }
  0x2f   :  { %632 = vmatprep.subr.bf16.mxu0 %v713_v47 }
  0x30   :  { %346 = vmatpush1.bf16.msra.mxu1 %v677_v20 }
  0x31   :  { %347 = vmatprep.subr.bf16.mxu1 %v678_v21 }
  0x32   :  { %633 = vmatpush3.bf16.msra.mxu0 %v714_v48 }
  0x33   :  { %634 = vmatprep.subr.bf16.mxu0 %v715_v49 }
  0x34   :  { %348 = vmatpush1.bf16.msra.mxu1 %v680_v22  ;;  %v607_v22 = vld [vmem:[%s916_s6] ss:$0 sm:$0xff] }
  0x35   :  { %349 = vmatprep.subr.bf16.mxu1 %v681_v23 }
  0x36   :  { %635 = vmatpush3.bf16.msra.mxu0 %v716_v50 }
  0x37   :  { %636 = vmatprep.subr.bf16.mxu0 %v717_v4 }
  0x38   :  { %350 = vmatpush1.bf16.msra.mxu1 %v683_v24 }
  0x39   :  { %351 = vmatprep.subr.bf16.mxu1 %v684_v25 }
  0x3a   :  { %637 = vmatpush3.bf16.msra.mxu0 %v718_v5 }
  0x3b   :  { %638 = vmatprep.subr.bf16.mxu0 %v719_v6 }
  0x3c   :  { %352 = vmatpush1.bf16.msra.mxu1 %v686_v26 }
  0x3d   :  { %353 = vmatprep.subr.bf16.mxu1 %v687_v27 }
  0x3e   :  { %639 = vmatpush3.bf16.msra.mxu0 %v720_v7 }
  0x40   :  { %354 = vmatpush1.bf16.msra.mxu1 %v689_v28 }
  0x41   :  { %355 = vmatprep.subr.bf16.mxu1 %v690_v29 }
  0x44   :  { %356 = vmatpush1.bf16.msra.mxu1 %v692_v30 }
  0x45   :  { %357 = vmatprep.subr.bf16.mxu1 %v693_v31 }
  0x48   :  { %358 = vmatpush1.bf16.msra.mxu1 %v695_v32 }
  0x49   :  { %359 = vmatprep.subr.bf16.mxu1 %v696_v33 }
  0x4c   :  { %360 = vmatpush1.bf16.msra.mxu1 %v698_v34 }
  0x4d   :  { %361 = vmatprep.subr.bf16.mxu1 %v699_v35 }
  0x50   :  { %362 = vmatpush1.bf16.msra.mxu1 %v701_v36 }
  0x51   :  { %363 = vmatprep.subr.bf16.mxu1 %v702_v37 }
  0x54   :  { %364 = vmatpush1.bf16.msra.mxu1 %v704_v38 }
  0xef   :  { %v118_v58 = vpop.f32.mrb[0].mxu0 }
  0xf0   :  { %v119_v59 = vadd.f32 %v118_v58, %v53_v56  ;;  %v120_v60 = vpop.f32.mrb[1].mxu0 }
  0xf1   :  { %v121_v61 = vadd.f32 %v120_v60, %v57_v57  ;;  %v122_v62 = vpop.f32.mrb[2].mxu0 }
  0xf2   :  { %v125_v63 = vmax.f32 %v119_v59, 0.0  ;;  %v123_v0 = vpop.f32.mrb[3].mxu0 }
  0xf3   :  { %v126_v1 = vmax.f32 %v121_v61, 0.0 }
  0xf4   :  { %v127_v3 = vpack.c.bf16 %v125_v63, %v125_v63 }
  0xf5   :  { %v128_v2 = vpack.c.bf16 %v126_v1, %v126_v1 }
  0xf7   :  { %365 = vmatprep.mubr.bf16.mxu1 %v128_v2 }
  0xf8   :  { %366 = vmatmul.mubr.bf16.vlgmr.msra.gmra.mrb[0].mxu1 %v127_v3 }
 0x1cb   :  { %v367_v11 = vpop.f32.mrb[0].mxu1 }
 0x1cc   :  { %v368_v12 = vadd.f32 %v367_v11, %v166_v9  ;;  %v369_v13 = vpop.f32.mrb[1].mxu1 }
 0x1cd   :  { %v370_v14 = vadd.f32 %v369_v13, %v170_v10  ;;  %v371_v15 = vpop.f32.mrb[2].mxu1 }
 0x1ce   :  { %v374_v16 = vmax.f32 %v368_v12, 0.0  ;;  %v372_v17 = vpop.f32.mrb[3].mxu1 }
 0x1cf   :  { %v375_v18 = vmax.f32 %v370_v14, 0.0 }
 0x1d0   :  { %v376_v20 = vpack.c.bf16 %v374_v16, %v374_v16 }
 0x1d1   :  { %v377_v19 = vpack.c.bf16 %v375_v18, %v375_v18 }
 0x1d3   :  { %545 = vmatprep.mubr.bf16.mxu0 %v377_v19 }
 0x1d4   :  { %546 = vmatmul.mubr.bf16.vlgmr.msra.gmra.mrb[4].mxu0 %v376_v20 }
 0x2a7   :  { %v640_v21 = vpop.f32.mrb[4].mxu0 }
 0x2a8   :  { %v641_v23 = vpop.f32.mrb[5].mxu0 }
 0x2a9   :  { %v642_v24 = vadd.f32 %v641_v23, %v640_v21  ;;  %v643_v25 = vpop.f32.mrb[6].mxu0 }
 0x2aa   :  { %v644_v26 = vpop.f32.mrb[7].mxu0 }
 0x2ab   :  { %v548_v27 = vadd.f32 %v642_v24, %v607_v22 }
 0x2ad   :  { %554 = vst.msk [vmem:[#allocation5] sm:$0xff] %vm553_vm1, %v548_v27 }
 0x2ae   :  { %754 = shalt.err (!%p751_p12)
}
 0x2af   :  { %s755_s6 = scalar_lea.hbm %s917_s7, 128 }
 0x2b0   :  { %p756_p13 = scmp.ne.s32.totalorder %s917_s7, %s755_s6  ;;  %p759_p0 = scmp.lt.u32.totalorder %s755_s6, %s917_s7 }
 0x2b2   :  { %p761_p1 = pnand %p759_p0, %p756_p13 }
 0x2b4   :  { %764 = shalt.err (!%p761_p1)
}
 0x2b5   :  { %564 = dma.vmem_to_hbm [thread:$0]  %s562_s9, 128, %s917_s7, [#allocation4]  }
 0x2b6   :  { %767 = dma.done.wait [#allocation4], 128  }
 0x2b7   :  { %768 = vsyncadd [#allocation4], 4294967168 }
 0x2b8   :  { %568 = vsyncpa [#allocation3], 1 }
 0x2b9   :  { %569 = vsyncpa [#allocation4], 1 }

</bundles_post_ra>
